<compile_context>
chip_gen: v7x
topology: tpu7x:2x2x1
jax: 0.10.0
libtpu: 0.0.40
codegen_flags: <defaults>
</compile_context>

<pallas_src>
import jax
import jax.numpy as jnp
from jax.experimental import pallas as pl
from jax.experimental.pallas import tpu as pltpu


D_IN = 16 * 16    # 256
H1 = 128
H2 = 64
N_OUT = 10
H2_PAD = 128      # fc2 outputs zero-padded to a full 128-lane tile
OUT_PAD = 16      # fc3 outputs zero-padded 10 -> 16 (narrow lane-dense writeback)


def _mlp_kernel(x_ref, w1_ref, b1_ref, w2_ref, b2_ref, w3_ref, b3_ref, o_ref):
    # x_ref: (TB, 256) f32 streamed tile; weights bf16 (VMEM-resident);
    # biases f32; o_ref: (TB, 16) f32 narrow output tile.
    # Cast to bf16 in-kernel (avoids a wrapper-side full-HBM astype pass).
    x = x_ref[...].astype(jnp.bfloat16)

    # fc1 + relu : (TB,256) @ (256,128) -> (TB,128) f32
    h1 = jnp.dot(x, w1_ref[...], preferred_element_type=jnp.float32) + b1_ref[...]
    h1 = jnp.maximum(h1, 0.0)

    # fc2 + relu : (TB,128) @ (128,128 zero-padded) -> (TB,128) f32
    #              (cols 64..127 are exactly 0: zero weight cols + zero bias)
    h2 = jnp.dot(h1.astype(jnp.bfloat16), w2_ref[...],
                 preferred_element_type=jnp.float32) + b2_ref[...]
    h2 = jnp.maximum(h2, 0.0)

    # fc3 : (TB,128) @ (128,16 zero-padded) -> (TB,16) f32
    #       (rows 64..127 of w3 only ever multiply the exact-zero h2 cols;
    #        cols 10..15 of w3/b3 are 0 -> cols 10..15 of out are 0)
    out = jnp.dot(h2.astype(jnp.bfloat16), w3_ref[...],
                  preferred_element_type=jnp.float32) + b3_ref[...]
    o_ref[...] = out


def mlp_forward(x, params, *, tb=4096):
    """x: any shape with 256 trailing elements per sample (mirrors x.view(-1, 256))."""
    w1, b1, w2, b2, w3, b3 = params

    # ---- wrapper-side layout plumbing (no full-array compute passes) ----
    xf = x.reshape(-1, D_IN)              # keep native dtype; bf16 cast is in-kernel
    B = xf.shape[0]
    B8 = ((B + 7) // 8) * 8               # sublane-align the batch

    # Batch tile: multiple of 8 sublanes; large by default (4096 rows) so the
    # per-step pipeline overhead is noise; capped at ceil(B/2) so the parallel
    # batch axis yields >= 2 grid steps (both v7x TensorCores busy) whenever
    # the batch is big enough to split.
    half = (((B8 + 1) // 2) + 7) // 8 * 8
    TB = max(8, (min(tb, B8, half) // 8) * 8)
    Bp = pl.cdiv(B8, TB) * TB
    if Bp != B:
        # Tail-only padding (no-op when B is already TB-divisible; large ragged
        # batches should prefer TB-divisible sizes to avoid this copy).
        xf = jnp.pad(xf, ((0, Bp - B), (0, 0)))

    # Zero-pad fc2 to a full 128-lane tile and fc3 to a narrow 16-lane output
    # slab (costs <100 KB of resident weight bytes, removes all masked math).
    w2p = jnp.pad(w2, ((0, 0), (0, H2_PAD - H2)))                   # (128, 128)
    b2p = jnp.pad(b2, ((0, 0), (0, H2_PAD - H2)))                   # (1, 128)
    w3p = jnp.pad(w3, ((0, H2_PAD - H2), (0, OUT_PAD - N_OUT)))     # (128, 16)
    b3p = jnp.pad(b3, ((0, 0), (0, OUT_PAD - N_OUT)))               # (1, 16)

    w1b = w1.astype(jnp.bfloat16)
    w2b = w2p.astype(jnp.bfloat16)
    w3b = w3p.astype(jnp.bfloat16)
    b1f = b1.astype(jnp.float32)
    b2f = b2p.astype(jnp.float32)
    b3f = b3p.astype(jnp.float32)

    grid = (Bp // TB,)
    flops = 2 * Bp * (D_IN * H1 + H1 * H2_PAD + H2_PAD * OUT_PAD)
    bytes_accessed = (Bp * D_IN * 4 + Bp * OUT_PAD * 4              # streamed x / out
                      + (D_IN * H1 + H1 * H2_PAD + H2_PAD * OUT_PAD) * 2  # bf16 weights
                      + (H1 + H2_PAD + OUT_PAD) * 4)                # f32 biases

    out_padded = pl.pallas_call(
        _mlp_kernel,
        out_shape=jax.ShapeDtypeStruct((Bp, OUT_PAD), jnp.float32),
        grid=grid,
        in_specs=[
            pl.BlockSpec((TB, D_IN), lambda i: (i, 0)),        # x: streamed per tile
            # Constant block index -> each weight/bias is DMA'd once and stays
            # VMEM-resident across the grid (~190 KiB total; default buffering
            # kept since VMEM headroom is ample at these tile sizes).
            pl.BlockSpec((D_IN, H1), lambda i: (0, 0)),        # w1
            pl.BlockSpec((1, H1), lambda i: (0, 0)),           # b1
            pl.BlockSpec((H1, H2_PAD), lambda i: (0, 0)),      # w2 (padded)
            pl.BlockSpec((1, H2_PAD), lambda i: (0, 0)),       # b2 (padded)
            pl.BlockSpec((H2_PAD, OUT_PAD), lambda i: (0, 0)), # w3 (padded)
            pl.BlockSpec((1, OUT_PAD), lambda i: (0, 0)),      # b3 (padded)
        ],
        out_specs=pl.BlockSpec((TB, OUT_PAD), lambda i: (i, 0)),
        compiler_params=pltpu.CompilerParams(
            dimension_semantics=("parallel",),                 # megacore split on v7x
            vmem_limit_bytes=32 * 1024 * 1024,                 # safe on v5e/v6e/v7x
        ),
        cost_estimate=pl.CostEstimate(
            flops=flops, transcendentals=0, bytes_accessed=bytes_accessed),
    )(xf, w1b, b1f, w2b, b2f, w3b, b3f)

    # 16-wide f32 output makes this slice near-free (64 B/sample of traffic).
    return out_padded[:B, :N_OUT]


def init_params(key):
    """nn.Linear default init: uniform(-1/sqrt(fan_in), 1/sqrt(fan_in)).
    Weights kept as (in, out) = transpose of PyTorch's (out, in)."""
    def linear(key, fan_in, fan_out):
        kw, kb = jax.random.split(key)
        bound = 1.0 / jnp.sqrt(fan_in)
        w = jax.random.uniform(kw, (fan_in, fan_out), jnp.float32, -bound, bound)
        b = jax.random.uniform(kb, (1, fan_out), jnp.float32, -bound, bound)
        return w, b

    k1, k2, k3 = jax.random.split(key, 3)
    w1, b1 = linear(k1, D_IN, H1)
    w2, b2 = linear(k2, H1, H2)
    w3, b3 = linear(k3, H2, N_OUT)
    return (w1, b1, w2, b2, w3, b3)


def _reference(x, params):
    """Pure-JAX f32 reference (PyTorch semantics)."""
    w1, b1, w2, b2, w3, b3 = params
    xf = x.reshape(-1, D_IN).astype(jnp.float32)
    h1 = jnp.maximum(xf @ w1 + b1, 0.0)
    h2 = jnp.maximum(h1 @ w2 + b2, 0.0)
    return h2 @ w3 + b3


if __name__ == "__main__":
    key = jax.random.PRNGKey(0)
    kx, kp = jax.random.split(key)

    # Small input consistent with forward(): batch=2, single-channel 16x16 "images".
    x = jax.random.normal(kx, (2, 1, 16, 16), dtype=jnp.float32)
    params = init_params(kp)

    out = mlp_forward(x, params)
    out = jax.block_until_ready(out)

    ref = _reference(x, params)
    assert out.shape == (2, N_OUT), out.shape
    # bf16 operands (f32 accumulation) -> loosened tolerance vs. the f32 reference.
    assert jnp.allclose(out, ref, atol=2e-2, rtol=2e-2), "mismatch vs reference"

    print("KERNEL_OK")
</pallas_src>

<mosaic_0001>
module attributes {stable_mosaic.version = 11 : i64} {
  func.func @_mlp_kernel(%arg0: i32, %arg1: memref<8x256xf32, #tpu.memory_space<vmem>>, %arg2: memref<256x128xbf16, #tpu.memory_space<vmem>>, %arg3: memref<1x128xf32, #tpu.memory_space<vmem>>, %arg4: memref<128x128xbf16, #tpu.memory_space<vmem>>, %arg5: memref<1x128xf32, #tpu.memory_space<vmem>>, %arg6: memref<128x16xbf16, #tpu.memory_space<vmem>>, %arg7: memref<1x16xf32, #tpu.memory_space<vmem>>, %arg8: memref<8x16xf32, #tpu.memory_space<vmem>>) attributes {dimension_semantics = [#tpu.dimension_semantics<parallel>], iteration_bounds = array<i64: 1>, scalar_prefetch = 0 : i64, scratch_operands = 0 : i64, tpu.core_type = #tpu.core_type<tc>, window_params = [{transform_indices = @transform_0, window_bounds = array<i64: 8, 256>}, {pipeline_mode = #tpu.pipeline_mode<synchronous>, transform_indices = @transform_1, window_bounds = array<i64: 256, 128>}, {pipeline_mode = #tpu.pipeline_mode<synchronous>, transform_indices = @transform_2, window_bounds = array<i64: 1, 128>}, {pipeline_mode = #tpu.pipeline_mode<synchronous>, transform_indices = @transform_3, window_bounds = array<i64: 128, 128>}, {pipeline_mode = #tpu.pipeline_mode<synchronous>, transform_indices = @transform_4, window_bounds = array<i64: 1, 128>}, {pipeline_mode = #tpu.pipeline_mode<synchronous>, transform_indices = @transform_5, window_bounds = array<i64: 128, 16>}, {pipeline_mode = #tpu.pipeline_mode<synchronous>, transform_indices = @transform_6, window_bounds = array<i64: 1, 16>}, {transform_indices = @transform_7, window_bounds = array<i64: 8, 16>}]} {
    %c0 = arith.constant 0 : index
    %c0_0 = arith.constant 0 : index
    %0 = vector.load %arg1[%c0, %c0_0] : memref<8x256xf32, #tpu.memory_space<vmem>>, vector<8x256xf32>
    %1 = arith.truncf %0 : vector<8x256xf32> to vector<8x256xbf16>
    %c0_1 = arith.constant 0 : index
    %c0_2 = arith.constant 0 : index
    %2 = vector.load %arg2[%c0_1, %c0_2] : memref<256x128xbf16, #tpu.memory_space<vmem>>, vector<256x128xbf16>
    %cst = arith.constant dense<0.000000e+00> : vector<8x128xf32>
    %3 = tpu.matmul %1, %2, %cst {dimension_numbers = #tpu.dot_dimension_numbers<[1], [0], [0], [1], [0, 0, 1, 1], [], []>} : vector<8x256xbf16>, vector<256x128xbf16>, vector<8x128xf32> -> vector<8x128xf32>
    %c0_3 = arith.constant 0 : index
    %c0_4 = arith.constant 0 : index
    %4 = vector.load %arg3[%c0_3, %c0_4] : memref<1x128xf32, #tpu.memory_space<vmem>>, vector<1x128xf32>
    %5 = vector.broadcast %4 : vector<1x128xf32> to vector<8x128xf32>
    %6 = arith.addf %3, %5 : vector<8x128xf32>
    %cst_5 = arith.constant 0.000000e+00 : f32
    %7 = vector.broadcast %cst_5 : f32 to vector<8x128xf32>
    %8 = arith.maximumf %6, %7 : vector<8x128xf32>
    %9 = arith.truncf %8 : vector<8x128xf32> to vector<8x128xbf16>
    %c0_6 = arith.constant 0 : index
    %c0_7 = arith.constant 0 : index
    %10 = vector.load %arg4[%c0_6, %c0_7] : memref<128x128xbf16, #tpu.memory_space<vmem>>, vector<128x128xbf16>
    %cst_8 = arith.constant dense<0.000000e+00> : vector<8x128xf32>
    %11 = tpu.matmul %9, %10, %cst_8 {dimension_numbers = #tpu.dot_dimension_numbers<[1], [0], [0], [1], [0, 0, 1, 1], [], []>} : vector<8x128xbf16>, vector<128x128xbf16>, vector<8x128xf32> -> vector<8x128xf32>
    %c0_9 = arith.constant 0 : index
    %c0_10 = arith.constant 0 : index
    %12 = vector.load %arg5[%c0_9, %c0_10] : memref<1x128xf32, #tpu.memory_space<vmem>>, vector<1x128xf32>
    %13 = vector.broadcast %12 : vector<1x128xf32> to vector<8x128xf32>
    %14 = arith.addf %11, %13 : vector<8x128xf32>
    %cst_11 = arith.constant 0.000000e+00 : f32
    %15 = vector.broadcast %cst_11 : f32 to vector<8x128xf32>
    %16 = arith.maximumf %14, %15 : vector<8x128xf32>
    %17 = arith.truncf %16 : vector<8x128xf32> to vector<8x128xbf16>
    %c0_12 = arith.constant 0 : index
    %c0_13 = arith.constant 0 : index
    %18 = vector.load %arg6[%c0_12, %c0_13] : memref<128x16xbf16, #tpu.memory_space<vmem>>, vector<128x16xbf16>
    %cst_14 = arith.constant dense<0.000000e+00> : vector<8x16xf32>
    %19 = tpu.matmul %17, %18, %cst_14 {dimension_numbers = #tpu.dot_dimension_numbers<[1], [0], [0], [1], [0, 0, 1, 1], [], []>} : vector<8x128xbf16>, vector<128x16xbf16>, vector<8x16xf32> -> vector<8x16xf32>
    %c0_15 = arith.constant 0 : index
    %c0_16 = arith.constant 0 : index
    %20 = vector.load %arg7[%c0_15, %c0_16] : memref<1x16xf32, #tpu.memory_space<vmem>>, vector<1x16xf32>
    %21 = vector.broadcast %20 : vector<1x16xf32> to vector<8x16xf32>
    %22 = arith.addf %19, %21 : vector<8x16xf32>
    %c0_17 = arith.constant 0 : index
    %c0_18 = arith.constant 0 : index
    %23 = vector.load %arg8[%c0_17, %c0_18] : memref<8x16xf32, #tpu.memory_space<vmem>>, vector<8x16xf32>
    tpu.vector_store %arg8[%c0_17, %c0_18], %22 {strides = array<i32>} : memref<8x16xf32, #tpu.memory_space<vmem>>, vector<8x16xf32>,
    return
  }
  func.func @transform_0(%arg0: i32) -> (i32, i32) {
    %c0_i32 = arith.constant 0 : i32
    %c0_i32_0 = arith.constant 0 : i32
    return %arg0, %c0_i32 : i32, i32
  }
  func.func @transform_1(%arg0: i32) -> (i32, i32) {
    %c0_i32 = arith.constant 0 : i32
    %c0_i32_0 = arith.constant 0 : i32
    %c0_i32_1 = arith.constant 0 : i32
    return %c0_i32, %c0_i32_0 : i32, i32
  }
  func.func @transform_2(%arg0: i32) -> (i32, i32) {
    %c0_i32 = arith.constant 0 : i32
    %c0_i32_0 = arith.constant 0 : i32
    %c0_i32_1 = arith.constant 0 : i32
    return %c0_i32, %c0_i32_0 : i32, i32
  }
  func.func @transform_3(%arg0: i32) -> (i32, i32) {
    %c0_i32 = arith.constant 0 : i32
    %c0_i32_0 = arith.constant 0 : i32
    %c0_i32_1 = arith.constant 0 : i32
    return %c0_i32, %c0_i32_0 : i32, i32
  }
  func.func @transform_4(%arg0: i32) -> (i32, i32) {
    %c0_i32 = arith.constant 0 : i32
    %c0_i32_0 = arith.constant 0 : i32
    %c0_i32_1 = arith.constant 0 : i32
    return %c0_i32, %c0_i32_0 : i32, i32
  }
  func.func @transform_5(%arg0: i32) -> (i32, i32) {
    %c0_i32 = arith.constant 0 : i32
    %c0_i32_0 = arith.constant 0 : i32
    %c0_i32_1 = arith.constant 0 : i32
    return %c0_i32, %c0_i32_0 : i32, i32
  }
  func.func @transform_6(%arg0: i32) -> (i32, i32) {
    %c0_i32 = arith.constant 0 : i32
    %c0_i32_0 = arith.constant 0 : i32
    %c0_i32_1 = arith.constant 0 : i32
    return %c0_i32, %c0_i32_0 : i32, i32
  }
  func.func @transform_7(%arg0: i32) -> (i32, i32) {
    %c0_i32 = arith.constant 0 : i32
    %c0_i32_0 = arith.constant 0 : i32
    return %arg0, %c0_i32 : i32, i32
  }
}

</mosaic_0001>

<bundles_post_ra>
// kernel: tpu_custom_call.1
= control target key start
LH: loop header
LB: loop body
LE: loop exit
PB: predicated region body
PF: predicated region fallthrough
CT: control target
= control target key end

     0   :  { %12 = vsyncpa [#allocation3], 0  ;;  %s816_s0 = inlined_call_operand.vmem [shape: f32[8,256], index: 0, kind: input, shape index: {}]   ;;  %s817_s1 = inlined_call_operand.hbm [shape: bf16[256,128], index: 1, kind: input, shape index: {}]   ;;  %s818_s2 = inlined_call_operand.vmem [shape: f32[1,128], index: 2, kind: input, shape index: {}]   ;;  %s819_s3 = inlined_call_operand.vmem [shape: bf16[128,128], index: 3, kind: input, shape index: {}]   ;;  %s820_s4 = inlined_call_operand.vmem [shape: f32[1,128], index: 4, kind: input, shape index: {}]   ;;  %s821_s5 = inlined_call_operand.vmem [shape: bf16[128,16], index: 5, kind: input, shape index: {}]   ;;  %s822_s6 = inlined_call_operand.vmem [shape: f32[1,16], index: 6, kind: input, shape index: {}]   ;;  %s823_s7 = inlined_call_operand.hbm [shape: f32[8,16], index: 7, kind: output, shape index: {}]  }
   0x1   :  { %13 = vsyncpa [#allocation4], 0  ;;  %s665_s24 = smov [#allocation2]   ;;  %s617_s28 = scalar_lea.hbm %s817_s1, 2048 }
   0x2   :  { %s21_s25 = sshll.u32 %s665_s24, 4  ;;  %p618_p0 = scmp.ne.s32.totalorder %s817_s1, %s617_s28  ;;  %s22_s25 = int_to_ptr.vmem [resolvable:$true] %s21_s25 }
   0x3   :  { %p621_p1 = scmp.lt.u32.totalorder %s617_s28, %s817_s1 }
   0x5   :  { %p623_p2 = pnand %p621_p1, %p618_p0 }
   0x7   :  { %626 = shalt.err (!%p623_p2)
}
   0x8   :  { %s627_s10 = scalar_lea.vmem %s22_s25, 2048  ;;  %p632_p4 = scmp.lt.s32.totalorder %s22_s25, %s22_s25 }
   0x9   :  { %p628_p3 = scmp.ne.s32.totalorder %s22_s25, %s627_s10  ;;  %p633_p5 = scmp.lt.s32.totalorder %s627_s10, %s627_s10 }
   0xb   :  { %p634_p6 = por %p633_p5, %p632_p4 }
   0xd   :  { %p635_p7 = pnand %p634_p6, %p628_p3 }
   0xf   :  { %638 = shalt.err (!%p635_p7)
}
  0x10   :  { %s666_s11 = smov 64   ;;  %s667_s12 = smov 4  }
  0x11   :  { %27 = dma.hbm_to_vmem [thread:$0]  %s817_s1, 2048, %s22_s25, [#allocation3], %s666_s11, %s666_s11, %s667_s12  }
  0x12   :  { %661 = dma.done.wait [#allocation3], 2048  }
  0x13   :  { %662 = vsyncadd [#allocation3], 4294965248  ;;  %v668_v0 = vmov 0.0   ;;  %v585_v1 = vld [vmem:[#allocation2 + $0x40] sm:$0xff]   ;;  %v587_v3 = vld [vmem:[#allocation2 + $0x48] sm:$0xff]   ;;  %vm669_vm0 = vmmov 0  }
  0x14   :  { %539 = vmatprep.subr.bf16.mxu1 %v668_v0  ;;  %v586_v2 = vld [vmem:[#allocation2] sm:$0xff]   ;;  %499 = vmatprep.subr.bf16.mxu0 %v585_v1  ;;  %v588_v4 = vld [vmem:[#allocation2 + $0x8] sm:$0xff]   ;;  %v589_v5 = vld [vmem:[#allocation2 + $0x50] sm:$0xff]   ;;  %s670_s28 = smov [#allocation5]   ;;  %vm447_vm1 = vcmask 130048  }
  0x15   :  { %500 = vmatpush3.bf16.msra.mxu0 %v586_v2  ;;  %v590_v6 = vld [vmem:[#allocation2 + $0x10] sm:$0xff]   ;;  %v591_v7 = vld [vmem:[#allocation2 + $0x58] sm:$0xff]   ;;  %v593_v9 = vld [vmem:[#allocation2 + $0x60] sm:$0xff]   ;;  %555 = vmatprep.mubr.msk.bf16.mxu1 %vm669_vm0, %v668_v0  ;;  %s455_s29 = sshll.u32 %s670_s28, 4  ;;  %s456_s29 = int_to_ptr.vmem [resolvable:$true] %s455_s29 }
  0x16   :  { %501 = vmatprep.subr.bf16.mxu0 %v587_v3  ;;  %v592_v8 = vld [vmem:[#allocation2 + $0x18] sm:$0xff]   ;;  %v594_v10 = vld [vmem:[#allocation2 + $0x20] sm:$0xff]   ;;  %v595_v11 = vld [vmem:[#allocation2 + $0x68] sm:$0xff]   ;;  %p644_p9 = scmp.lt.s32.totalorder %s456_s29, %s456_s29 }
  0x17   :  { %v43_v12 = vld [vmem:[%s816_s0 + $0x8] sm:$0xff]  ;;  %v601_v14 = vld [vmem:[%s819_s3] sm:$0xff]   ;;  %v597_v16 = vld [vmem:[#allocation2 + $0x70] sm:$0xff]  }
  0x18   :  { %v45_v13 = vpack.c.bf16 %v43_v12, %v43_v12  ;;  %v596_v15 = vld [vmem:[#allocation2 + $0x28] sm:$0xff]   ;;  %540 = vmatpush3.bf16.msra.mxu1 %v601_v14  ;;  %v598_v18 = vld [vmem:[#allocation2 + $0x30] sm:$0xff]   ;;  %v599_v19 = vld [vmem:[#allocation2 + $0x78] sm:$0xff]  }
  0x19   :  { %502 = vmatpush3.bf16.msra.mxu0 %v588_v4  ;;  %v602_v17 = vld [vmem:[%s819_s3 + $0x8] sm:$0xff]   ;;  %541 = vmatprep.subr.bf16.mxu1 %v668_v0  ;;  %v603_v20 = vld [vmem:[%s819_s3 + $0x10] sm:$0xff]   ;;  %v600_v21 = vld [vmem:[#allocation2 + $0x38] sm:$0xff]  }
  0x1a   :  { %503 = vmatprep.subr.bf16.mxu0 %v589_v5  ;;  %213 = vmatprep.mubr.bf16.mxu0 %v45_v13  ;;  %v42_v22 = vld [vmem:[%s816_s0] sm:$0xff]  ;;  %v604_v23 = vld [vmem:[%s819_s3 + $0x18] sm:$0xff]   ;;  %v606_v26 = vld [vmem:[%s819_s3 + $0x28] sm:$0xff]  }
  0x1b   :  { %v44_v24 = vpack.c.bf16 %v42_v22, %v42_v22  ;;  %v605_v25 = vld [vmem:[%s819_s3 + $0x20] sm:$0xff]   ;;  %v607_v27 = vld [vmem:[%s819_s3 + $0x30] sm:$0xff]   ;;  %v608_v28 = vld [vmem:[%s819_s3 + $0x38] sm:$0xff]  }
  0x1c   :  { %542 = vmatpush3.bf16.msra.mxu1 %v602_v17  ;;  %v609_v29 = vld [vmem:[%s821_s5] sm:$0xff]   ;;  %v610_v30 = vld [vmem:[%s821_s5 + $0x8] sm:$0xff]   ;;  %v611_v31 = vld [vmem:[%s821_s5 + $0x10] sm:$0xff]  }
  0x1d   :  { %504 = vmatpush3.bf16.msra.mxu0 %v590_v6  ;;  %543 = vmatprep.subr.bf16.mxu1 %v668_v0  ;;  %v612_v32 = vld [vmem:[%s821_s5 + $0x18] sm:$0xff]   ;;  %v613_v33 = vld [vmem:[%s821_s5 + $0x20] sm:$0xff]   ;;  %v614_v34 = vld [vmem:[%s821_s5 + $0x28] sm:$0xff]  }
  0x1e   :  { %505 = vmatprep.subr.bf16.mxu0 %v591_v7  ;;  %v464_v36 = vld [vmem:[%s818_s2] ss:$0 sm:$0xff]  ;;  %v615_v44 = vld [vmem:[%s821_s5 + $0x30] sm:$0xff]   ;;  %v616_v45 = vld [vmem:[%s821_s5 + $0x38] sm:$0xff]  }
  0x1f   :  { %v481_v46 = vld [vmem:[%s820_s4] ss:$0 sm:$0xff]  ;;  %s639_s4 = scalar_lea.vmem %s456_s29, 128 }
  0x20   :  { %544 = vmatpush3.bf16.msra.mxu1 %v603_v20  ;;  %v490_v54 = vld [vmem:[%s822_s6] ss:$0 sm:$0xff]  ;;  %p640_p8 = scmp.ne.s32.totalorder %s456_s29, %s639_s4  ;;  %p645_p10 = scmp.lt.s32.totalorder %s639_s4, %s639_s4 }
  0x21   :  { %506 = vmatpush3.bf16.msra.mxu0 %v592_v8  ;;  %545 = vmatprep.subr.bf16.mxu1 %v668_v0 }
  0x22   :  { %507 = vmatprep.subr.bf16.mxu0 %v593_v9  ;;  %p646_p11 = por %p645_p10, %p644_p9 }
  0x24   :  { %546 = vmatpush3.bf16.msra.mxu1 %v604_v23  ;;  %p647_p12 = pnand %p646_p11, %p640_p8 }
  0x25   :  { %508 = vmatpush3.bf16.msra.mxu0 %v594_v10  ;;  %547 = vmatprep.subr.bf16.mxu1 %v668_v0 }
  0x26   :  { %509 = vmatprep.subr.bf16.mxu0 %v595_v11 }
  0x28   :  { %548 = vmatpush3.bf16.msra.mxu1 %v605_v25 }
  0x29   :  { %510 = vmatpush3.bf16.msra.mxu0 %v596_v15  ;;  %549 = vmatprep.subr.bf16.mxu1 %v668_v0 }
  0x2a   :  { %511 = vmatprep.subr.bf16.mxu0 %v597_v16 }
  0x2c   :  { %550 = vmatpush3.bf16.msra.mxu1 %v606_v26 }
  0x2d   :  { %512 = vmatpush3.bf16.msra.mxu0 %v598_v18  ;;  %551 = vmatprep.subr.bf16.mxu1 %v668_v0 }
  0x2e   :  { %513 = vmatprep.subr.bf16.mxu0 %v599_v19 }
  0x30   :  { %552 = vmatpush3.bf16.msra.mxu1 %v607_v27 }
  0x31   :  { %514 = vmatpush3.bf16.msra.mxu0 %v600_v21  ;;  %553 = vmatprep.subr.bf16.mxu1 %v668_v0 }
  0x32   :  { %559 = vmatprep.subr.bf16.mxu0 %v668_v0 }
  0x34   :  { %214 = vmatmul.mubr.bf16.vlgmr.msra.gmra.mrb[0].mxu0 %v44_v24  ;;  %554 = vmatpush3.bf16.msra.mxu1 %v608_v28 }
  0x35   :  { %575 = vmatprep.mubr.msk.bf16.mxu0 %vm669_vm0, %v668_v0  ;;  %560 = vmatpush3.bf16.msra.mxu0 %v609_v29 }
  0x36   :  { %561 = vmatprep.subr.bf16.mxu0 %v668_v0 }
  0x39   :  { %562 = vmatpush3.bf16.msra.mxu0 %v610_v30 }
  0x3a   :  { %563 = vmatprep.subr.bf16.mxu0 %v668_v0 }
  0x3d   :  { %564 = vmatpush3.bf16.msra.mxu0 %v611_v31 }
  0x3e   :  { %565 = vmatprep.subr.bf16.mxu0 %v668_v0 }
  0x41   :  { %566 = vmatpush3.bf16.msra.mxu0 %v612_v32 }
  0x42   :  { %567 = vmatprep.subr.bf16.mxu0 %v668_v0 }
  0x45   :  { %568 = vmatpush3.bf16.msra.mxu0 %v613_v33 }
  0x46   :  { %569 = vmatprep.subr.bf16.mxu0 %v668_v0 }
  0x49   :  { %570 = vmatpush3.bf16.msra.mxu0 %v614_v34 }
  0x4a   :  { %571 = vmatprep.subr.bf16.mxu0 %v668_v0 }
  0x4d   :  { %572 = vmatpush3.bf16.msra.mxu0 %v615_v44 }
  0x4e   :  { %573 = vmatprep.subr.bf16.mxu0 %v668_v0 }
  0x51   :  { %574 = vmatpush3.bf16.msra.mxu0 %v616_v45 }
 0x107   :  { %v515_v35 = vpop.f32.mrb[0].mxu0 }
 0x108   :  { %v516_v37 = vpop.f32.mrb[1].mxu0 }
 0x109   :  { %v517_v38 = vadd.f32 %v516_v37, %v515_v35  ;;  %v518_v39 = vpop.f32.mrb[2].mxu0 }
 0x10a   :  { %v519_v40 = vpop.f32.mrb[3].mxu0 }
 0x10b   :  { %v216_v41 = vadd.f32 %v517_v38, %v464_v36 }
 0x10d   :  { %v221_v42 = vmax.f32 %v216_v41, 0.0 }
 0x10f   :  { %v222_v43 = vpack.c.bf16 %v221_v42, %v221_v42 }
 0x111   :  { %556 = vmatmul.mubr.bf16.vlgmr.msra.gmra.mrb[0].mxu1 %v222_v43 }
 0x1e4   :  { %v328_v47 = vpop.f32.mrb[0].mxu1 }
 0x1e5   :  { %v329_v48 = vadd.f32 %v481_v46, %v328_v47  ;;  %v557_v49 = vpop.f32.mrb[1].mxu1 }
 0x1e6   :  { %v331_v50 = vpop.f32.mrb[2].mxu1 }
 0x1e7   :  { %v334_v51 = vmax.f32 %v329_v48, 0.0  ;;  %v558_v52 = vpop.f32.mrb[3].mxu1 }
 0x1e9   :  { %v335_v53 = vpack.c.bf16 %v334_v51, %v334_v51 }
 0x1eb   :  { %576 = vmatmul.mubr.bf16.vlgmr.msra.gmra.mrb[4].mxu0 %v335_v53 }
 0x2be   :  { %v441_v55 = vpop.f32.mrb[4].mxu0 }
 0x2bf   :  { %v442_v56 = vadd.f32 %v490_v54, %v441_v55  ;;  %v577_v57 = vpop.f32.mrb[5].mxu0 }
 0x2c0   :  { %v444_v58 = vpop.f32.mrb[6].mxu0 }
 0x2c1   :  { %v578_v59 = vpop.f32.mrb[7].mxu0  ;;  %448 = vst.msk [vmem:[#allocation5] sm:$0xff] %vm447_vm1, %v442_v56 }
 0x2c2   :  { %650 = shalt.err (!%p647_p12)
}
 0x2c3   :  { %s651_s6 = scalar_lea.hbm %s823_s7, 128 }
 0x2c4   :  { %p652_p13 = scmp.ne.s32.totalorder %s823_s7, %s651_s6  ;;  %p655_p0 = scmp.lt.u32.totalorder %s651_s6, %s823_s7 }
 0x2c6   :  { %p657_p1 = pnand %p655_p0, %p652_p13 }
 0x2c8   :  { %660 = shalt.err (!%p657_p1)
}
 0x2c9   :  { %458 = dma.vmem_to_hbm [thread:$0]  %s456_s29, 128, %s823_s7, [#allocation4]  }
 0x2ca   :  { %663 = dma.done.wait [#allocation4], 128  }
 0x2cb   :  { %664 = vsyncadd [#allocation4], 4294967168 }
 0x2cc   :  { %462 = vsyncpa [#allocation3], 1 }
 0x2cd   :  { %463 = vsyncpa [#allocation4], 1 }

</bundles_post_ra>
